<compile_context>
chip_gen: v7x
topology: tpu7x:2x2x1
jax: 0.10.0
libtpu: 0.0.40
codegen_flags: <defaults>
</compile_context>

<pallas_src>
import functools

import jax
import jax.numpy as jnp
from jax.experimental import pallas as pl
from jax.experimental.pallas import tpu as pltpu


def _recon_loss_kernel(*refs, use_weight: bool, n_rows: int, tile_n: int):
    if use_weight:
        (sub_e_ref, sub_r_ref, loc_e_ref, loc_r_ref, rel_e_ref, rel_r_ref,
         w_ref, out_ref, acc_ref) = refs
    else:
        (sub_e_ref, sub_r_ref, loc_e_ref, loc_r_ref, rel_e_ref, rel_r_ref,
         out_ref, acc_ref) = refs
        w_ref = None

    i = pl.program_id(0)

    @pl.when(i == 0)
    def _():
        acc_ref[...] = jnp.zeros_like(acc_ref)

    f32 = jnp.float32
    d_sub = sub_r_ref[...].astype(f32) - sub_e_ref[...].astype(f32)
    d_loc = loc_r_ref[...].astype(f32) - loc_e_ref[...].astype(f32)
    d_rel = rel_r_ref[...].astype(f32) - rel_e_ref[...].astype(f32)
    sq_sub = d_sub * d_sub
    sq_loc = d_loc * d_loc
    sq_rel = d_rel * d_rel

    if use_weight:
        w = w_ref[...].astype(f32)                     # (tile_n, 3)
        contrib = (w[:, 0:1] * sq_sub                  # broadcast over lanes
                   + w[:, 1:2] * sq_loc
                   + w[:, 2:3] * sq_rel)               # (tile_n, d)
    else:
        contrib = sq_sub + sq_loc + sq_rel             # (tile_n, d)

    # Mask rows past sent_num: the tail tile reads undefined data past the
    # end of the arrays (no wrapper-side padding pass anymore).
    row_ids = i * tile_n + jax.lax.broadcasted_iota(jnp.int32, (tile_n, 1), 0)
    contrib = jnp.where(row_ids < n_rows, contrib, 0.0)

    # Deferred reduction: pure VPU accumulate; no per-step XLU reductions and
    # no narrow scalar loop-carried dependency.
    acc_ref[...] = acc_ref[...] + contrib

    @pl.when(i == pl.num_programs(0) - 1)
    def _():
        out_ref[...] = (jnp.sum(acc_ref[...], keepdims=True)
                        * (1.0 / float(n_rows)))


def _pick_tile_n(n, d, itemsize, budget_bytes=16 * 1024 * 1024):
    """Largest multiple-of-8 row tile keeping 6 double-buffered input tiles
    under `budget_bytes` (leaves headroom under the 32 MiB scoped limit set
    below, which is safe on v5e/v6e/v7x)."""
    per_row_bytes = 6 * 2 * d * itemsize
    t = budget_bytes // per_row_bytes
    t = (t // 8) * 8
    t = max(8, min(2048, t))
    n_up = max(8, ((n + 7) // 8) * 8)
    return int(min(t, n_up))


def visual_lang_reconstruct_loss(sub_phrase_emb, sub_phrase_recons,
                                 loc_phrase_emb, loc_phrase_recons,
                                 rel_phrase_emb, rel_phrase_recons,
                                 weights, *, use_weight: int, tile_n=None):
    n, d = sub_phrase_emb.shape
    assert d % 128 == 0, "embedding dim must be a multiple of 128 (lane width)"
    if n == 0:
        return jnp.float32(0.0)

    itemsize = jnp.dtype(sub_phrase_emb.dtype).itemsize
    if tile_n is None:
        tile_n = _pick_tile_n(n, d, itemsize)
    tile_n = int(tile_n)
    assert tile_n % 8 == 0

    grid = (pl.cdiv(n, tile_n),)
    emb_spec = pl.BlockSpec((tile_n, d), lambda i: (i, 0))

    weighted = bool(use_weight > 0)
    in_specs = [emb_spec] * 6
    args = [sub_phrase_emb, sub_phrase_recons,
            loc_phrase_emb, loc_phrase_recons,
            rel_phrase_emb, rel_phrase_recons]
    if weighted:
        in_specs.append(pl.BlockSpec((tile_n, 3), lambda i: (i, 0)))
        args.append(weights)

    out = pl.pallas_call(
        functools.partial(_recon_loss_kernel, use_weight=weighted,
                          n_rows=int(n), tile_n=tile_n),
        out_shape=jax.ShapeDtypeStruct((1, 1), jnp.float32),
        grid_spec=pltpu.PrefetchScalarGridSpec(
            num_scalar_prefetch=0,
            grid=grid,
            in_specs=in_specs,
            out_specs=pl.BlockSpec((1, 1), lambda i: (0, 0)),
            scratch_shapes=[pltpu.VMEM((tile_n, d), jnp.float32)],
        ),
        compiler_params=pltpu.CompilerParams(
            dimension_semantics=("arbitrary",),
            vmem_limit_bytes=32 * 1024 * 1024),
    )(*args)
    return out[0, 0]


def _reference(sub_e, sub_r, loc_e, loc_r, rel_e, rel_r, weights, use_weight):
    sub_loss = jnp.sum((sub_r - sub_e) ** 2, axis=1, keepdims=True)
    loc_loss = jnp.sum((loc_r - loc_e) ** 2, axis=1, keepdims=True)
    rel_loss = jnp.sum((rel_r - rel_e) ** 2, axis=1, keepdims=True)
    cat = jnp.concatenate([sub_loss, loc_loss, rel_loss], axis=1)
    if use_weight > 0:
        return jnp.mean(jnp.sum(weights * cat, axis=1), axis=0)
    return jnp.mean(jnp.sum(cat, axis=1), axis=0)


if __name__ == "__main__":
    key = jax.random.PRNGKey(0)
    dim = 512
    ok = True
    # sent_num=8: exact tile; sent_num=13: exercises the in-kernel tail mask.
    for sent_num in (8, 13):
        ks = jax.random.split(key, 7)
        sub_e = jax.random.normal(ks[0], (sent_num, dim), jnp.float32)
        sub_r = jax.random.normal(ks[1], (sent_num, dim), jnp.float32)
        loc_e = jax.random.normal(ks[2], (sent_num, dim), jnp.float32)
        loc_r = jax.random.normal(ks[3], (sent_num, dim), jnp.float32)
        rel_e = jax.random.normal(ks[4], (sent_num, dim), jnp.float32)
        rel_r = jax.random.normal(ks[5], (sent_num, dim), jnp.float32)
        weights = jax.nn.softmax(
            jax.random.normal(ks[6], (sent_num, 3), jnp.float32), axis=1)

        for use_weight in (1, 0):
            got = visual_lang_reconstruct_loss(
                sub_e, sub_r, loc_e, loc_r, rel_e, rel_r, weights,
                use_weight=use_weight)
            got = jax.block_until_ready(got)
            want = _reference(sub_e, sub_r, loc_e, loc_r, rel_e, rel_r,
                              weights, use_weight)
            ok = ok and bool(jnp.allclose(got, want, rtol=1e-4, atol=1e-4))

    if ok:
        print("KERNEL_OK")
    else:
        print("KERNEL_MISMATCH")
</pallas_src>

<mosaic_0001>
module attributes {stable_mosaic.version = 11 : i64} {
  func.func @_recon_loss_kernel(%arg0: i32, %arg1: memref<8x512xf32, #tpu.memory_space<vmem>>, %arg2: memref<8x512xf32, #tpu.memory_space<vmem>>, %arg3: memref<8x512xf32, #tpu.memory_space<vmem>>, %arg4: memref<8x512xf32, #tpu.memory_space<vmem>>, %arg5: memref<8x512xf32, #tpu.memory_space<vmem>>, %arg6: memref<8x512xf32, #tpu.memory_space<vmem>>, %arg7: memref<8x3xf32, #tpu.memory_space<vmem>>, %arg8: memref<1x1xf32, #tpu.memory_space<vmem>>, %arg9: memref<8x512xf32, #tpu.memory_space<vmem>>) attributes {dimension_semantics = [#tpu.dimension_semantics<arbitrary>], iteration_bounds = array<i64: 1>, scalar_prefetch = 0 : i64, scratch_operands = 1 : i64, tpu.core_type = #tpu.core_type<tc>, window_params = [{transform_indices = @transform_0, window_bounds = array<i64: 8, 512>}, {transform_indices = @transform_1, window_bounds = array<i64: 8, 512>}, {transform_indices = @transform_2, window_bounds = array<i64: 8, 512>}, {transform_indices = @transform_3, window_bounds = array<i64: 8, 512>}, {transform_indices = @transform_4, window_bounds = array<i64: 8, 512>}, {transform_indices = @transform_5, window_bounds = array<i64: 8, 512>}, {transform_indices = @transform_6, window_bounds = array<i64: 8, 3>}, {pipeline_mode = #tpu.pipeline_mode<synchronous>, transform_indices = @transform_7, window_bounds = array<i64: 1, 1>}]} {
    %c0_i32 = arith.constant 0 : i32
    %0 = arith.cmpi eq, %arg0, %c0_i32 : i32
    %1 = arith.extui %0 : i1 to i32
    %c0_i32_0 = arith.constant 0 : i32
    %2 = arith.cmpi ne, %1, %c0_i32_0 : i32
    scf.if %2 {
      %cst_21 = arith.constant 0.000000e+00 : f32
      %43 = vector.broadcast %cst_21 : f32 to vector<8x512xf32>
      %c0_22 = arith.constant 0 : index
      %c0_23 = arith.constant 0 : index
      %44 = vector.load %arg9[%c0_22, %c0_23] : memref<8x512xf32, #tpu.memory_space<vmem>>, vector<8x512xf32>
      tpu.vector_store %arg9[%c0_22, %c0_23], %43 {strides = array<i32>} : memref<8x512xf32, #tpu.memory_space<vmem>>, vector<8x512xf32>,
    } else {
    }
    %c0 = arith.constant 0 : index
    %c0_1 = arith.constant 0 : index
    %3 = vector.load %arg2[%c0, %c0_1] : memref<8x512xf32, #tpu.memory_space<vmem>>, vector<8x512xf32>
    %c0_2 = arith.constant 0 : index
    %c0_3 = arith.constant 0 : index
    %4 = vector.load %arg1[%c0_2, %c0_3] : memref<8x512xf32, #tpu.memory_space<vmem>>, vector<8x512xf32>
    %5 = arith.subf %3, %4 : vector<8x512xf32>
    %c0_4 = arith.constant 0 : index
    %c0_5 = arith.constant 0 : index
    %6 = vector.load %arg4[%c0_4, %c0_5] : memref<8x512xf32, #tpu.memory_space<vmem>>, vector<8x512xf32>
    %c0_6 = arith.constant 0 : index
    %c0_7 = arith.constant 0 : index
    %7 = vector.load %arg3[%c0_6, %c0_7] : memref<8x512xf32, #tpu.memory_space<vmem>>, vector<8x512xf32>
    %8 = arith.subf %6, %7 : vector<8x512xf32>
    %c0_8 = arith.constant 0 : index
    %c0_9 = arith.constant 0 : index
    %9 = vector.load %arg6[%c0_8, %c0_9] : memref<8x512xf32, #tpu.memory_space<vmem>>, vector<8x512xf32>
    %c0_10 = arith.constant 0 : index
    %c0_11 = arith.constant 0 : index
    %10 = vector.load %arg5[%c0_10, %c0_11] : memref<8x512xf32, #tpu.memory_space<vmem>>, vector<8x512xf32>
    %11 = arith.subf %9, %10 : vector<8x512xf32>
    %12 = arith.mulf %5, %5 : vector<8x512xf32>
    %13 = arith.mulf %8, %8 : vector<8x512xf32>
    %14 = arith.mulf %11, %11 : vector<8x512xf32>
    %c0_12 = arith.constant 0 : index
    %c0_13 = arith.constant 0 : index
    %15 = vector.load %arg7[%c0_12, %c0_13] : memref<8x3xf32, #tpu.memory_space<vmem>>, vector<8x3xf32>
    %16 = vector.extract_strided_slice %15 {offsets = [0, 0], sizes = [8, 1], strides = [1, 1]} : vector<8x3xf32> to vector<8x1xf32>
    %17 = vector.broadcast %16 : vector<8x1xf32> to vector<8x512xf32>
    %18 = arith.mulf %17, %12 : vector<8x512xf32>
    %19 = vector.extract_strided_slice %15 {offsets = [0, 1], sizes = [8, 1], strides = [1, 1]} : vector<8x3xf32> to vector<8x1xf32>
    %20 = vector.broadcast %19 : vector<8x1xf32> to vector<8x512xf32>
    %21 = arith.mulf %20, %13 : vector<8x512xf32>
    %22 = arith.addf %18, %21 : vector<8x512xf32>
    %23 = vector.extract_strided_slice %15 {offsets = [0, 2], sizes = [8, 1], strides = [1, 1]} : vector<8x3xf32> to vector<8x1xf32>
    %24 = vector.broadcast %23 : vector<8x1xf32> to vector<8x512xf32>
    %25 = arith.mulf %24, %14 : vector<8x512xf32>
    %26 = arith.addf %22, %25 : vector<8x512xf32>
    %c8_i32 = arith.constant 8 : i32
    %27 = arith.muli %arg0, %c8_i32 : i32
    %28 = tpu.iota {dimensions = array<i32: 0>} : vector<8x1xi32>
    %29 = vector.broadcast %27 : i32 to vector<8x1xi32>
    %30 = arith.addi %29, %28 : vector<8x1xi32>
    %c8_i32_14 = arith.constant 8 : i32
    %31 = vector.broadcast %c8_i32_14 : i32 to vector<8x1xi32>
    %32 = arith.cmpi slt, %30, %31 : vector<8x1xi32>
    %cst = arith.constant 0.000000e+00 : f32
    %33 = vector.shape_cast %32 : vector<8x1xi1> to vector<8x1xi1>
    %34 = vector.broadcast %33 : vector<8x1xi1> to vector<8x512xi1>
    %35 = vector.broadcast %cst : f32 to vector<8x512xf32>
    %36 = arith.select %34, %26, %35 : vector<8x512xi1>, vector<8x512xf32>
    %c0_15 = arith.constant 0 : index
    %c0_16 = arith.constant 0 : index
    %37 = vector.load %arg9[%c0_15, %c0_16] : memref<8x512xf32, #tpu.memory_space<vmem>>, vector<8x512xf32>
    %38 = arith.addf %37, %36 : vector<8x512xf32>
    %c0_17 = arith.constant 0 : index
    %c0_18 = arith.constant 0 : index
    %39 = vector.load %arg9[%c0_17, %c0_18] : memref<8x512xf32, #tpu.memory_space<vmem>>, vector<8x512xf32>
    tpu.vector_store %arg9[%c0_17, %c0_18], %38 {strides = array<i32>} : memref<8x512xf32, #tpu.memory_space<vmem>>, vector<8x512xf32>,
    %c0_i32_19 = arith.constant 0 : i32
    %40 = arith.cmpi eq, %arg0, %c0_i32_19 : i32
    %41 = arith.extui %40 : i1 to i32
    %c0_i32_20 = arith.constant 0 : i32
    %42 = arith.cmpi ne, %41, %c0_i32_20 : i32
    scf.if %42 {
      %c0_21 = arith.constant 0 : index
      %c0_22 = arith.constant 0 : index
      %43 = vector.load %arg9[%c0_21, %c0_22] : memref<8x512xf32, #tpu.memory_space<vmem>>, vector<8x512xf32>
      %44 = vector.shape_cast %43 : vector<8x512xf32> to vector<1x8x512xf32>
      %cst_23 = arith.constant dense<0.000000e+00> : vector<1xf32>
      %45 = vector.multi_reduction <add>, %44, %cst_23 [1, 2] : vector<1x8x512xf32> to vector<1xf32>
      %46 = vector.shape_cast %45 : vector<1xf32> to vector<1x1x1xf32>
      %47 = vector.extract %46[0, 0, 0] : f32 from vector<1x1x1xf32>
      %48 = vector.broadcast %47 : f32 to vector<1x1xf32>
      %cst_24 = arith.constant 1.250000e-01 : f32
      %49 = vector.broadcast %cst_24 : f32 to vector<1x1xf32>
      %50 = arith.mulf %48, %49 : vector<1x1xf32>
      %c0_25 = arith.constant 0 : index
      %c0_26 = arith.constant 0 : index
      %51 = vector.load %arg8[%c0_25, %c0_26] : memref<1x1xf32, #tpu.memory_space<vmem>>, vector<1x1xf32>
      tpu.vector_store %arg8[%c0_25, %c0_26], %50 {strides = array<i32>} : memref<1x1xf32, #tpu.memory_space<vmem>>, vector<1x1xf32>,
    } else {
    }
    return
  }
  func.func @transform_0(%arg0: i32) -> (i32, i32) {
    %c0_i32 = arith.constant 0 : i32
    %c0_i32_0 = arith.constant 0 : i32
    return %arg0, %c0_i32 : i32, i32
  }
  func.func @transform_1(%arg0: i32) -> (i32, i32) {
    %c0_i32 = arith.constant 0 : i32
    %c0_i32_0 = arith.constant 0 : i32
    return %arg0, %c0_i32 : i32, i32
  }
  func.func @transform_2(%arg0: i32) -> (i32, i32) {
    %c0_i32 = arith.constant 0 : i32
    %c0_i32_0 = arith.constant 0 : i32
    return %arg0, %c0_i32 : i32, i32
  }
  func.func @transform_3(%arg0: i32) -> (i32, i32) {
    %c0_i32 = arith.constant 0 : i32
    %c0_i32_0 = arith.constant 0 : i32
    return %arg0, %c0_i32 : i32, i32
  }
  func.func @transform_4(%arg0: i32) -> (i32, i32) {
    %c0_i32 = arith.constant 0 : i32
    %c0_i32_0 = arith.constant 0 : i32
    return %arg0, %c0_i32 : i32, i32
  }
  func.func @transform_5(%arg0: i32) -> (i32, i32) {
    %c0_i32 = arith.constant 0 : i32
    %c0_i32_0 = arith.constant 0 : i32
    return %arg0, %c0_i32 : i32, i32
  }
  func.func @transform_6(%arg0: i32) -> (i32, i32) {
    %c0_i32 = arith.constant 0 : i32
    %c0_i32_0 = arith.constant 0 : i32
    return %arg0, %c0_i32 : i32, i32
  }
  func.func @transform_7(%arg0: i32) -> (i32, i32) {
    %c0_i32 = arith.constant 0 : i32
    %c0_i32_0 = arith.constant 0 : i32
    %c0_i32_1 = arith.constant 0 : i32
    return %c0_i32, %c0_i32_0 : i32, i32
  }
}

</mosaic_0001>

<bundles_post_ra>
// kernel: tpu_custom_call.1
= control target key start
LH: loop header
LB: loop body
LE: loop exit
PB: predicated region body
PF: predicated region fallthrough
CT: control target
= control target key end

     0   :  { %12 = vsyncpa [#allocation4], 0  ;;  %s569_s0 = inlined_call_operand.hbm [shape: f32[8,512], index: 0, kind: input, shape index: {}]   ;;  %s570_s1 = inlined_call_operand.hbm [shape: f32[8,512], index: 1, kind: input, shape index: {}]   ;;  %s571_s2 = inlined_call_operand.hbm [shape: f32[8,512], index: 2, kind: input, shape index: {}]   ;;  %s572_s3 = inlined_call_operand.hbm [shape: f32[8,512], index: 3, kind: input, shape index: {}]   ;;  %s573_s4 = inlined_call_operand.hbm [shape: f32[8,512], index: 4, kind: input, shape index: {}]   ;;  %s574_s5 = inlined_call_operand.hbm [shape: f32[8,512], index: 5, kind: input, shape index: {}]   ;;  %s575_s6 = inlined_call_operand.vmem [shape: f32[8,3], index: 6, kind: input, shape index: {}]   ;;  %s576_s7 = inlined_call_operand.hbm [shape: f32[1,1], index: 7, kind: output, shape index: {}]  }
   0x1   :  { %13 = vsyncpa [#allocation7], 0 }
   0x2   :  { %14 = vsyncpa [#allocation10], 0 }
   0x3   :  { %15 = vsyncpa [#allocation13], 0 }
   0x4   :  { %16 = vsyncpa [#allocation5], 0  ;;  %s432_s24 = smov [#allocation6]   ;;  %s433_s26 = smov [#allocation9]  }
   0x5   :  { %s33_s25 = sshll.u32 %s432_s24, 4  ;;  %s53_s27 = sshll.u32 %s433_s26, 4  ;;  %s34_s25 = int_to_ptr.vmem [resolvable:$true] %s33_s25  ;;  %s54_s27 = int_to_ptr.vmem [resolvable:$true] %s53_s27 }
   0x6   :  { %s268_s30 = scalar_lea.hbm %s570_s1, 512 }
   0x7   :  { %p269_p0 = scmp.ne.s32.totalorder %s570_s1, %s268_s30  ;;  %p272_p1 = scmp.lt.u32.totalorder %s268_s30, %s570_s1 }
   0x9   :  { %p274_p2 = pnand %p272_p1, %p269_p0 }
   0xb   :  { %277 = shalt.err (!%p274_p2)
}
   0xc   :  { %s278_s12 = scalar_lea.vmem %s34_s25, 512  ;;  %p283_p4 = scmp.lt.s32.totalorder %s34_s25, %s34_s25 }
   0xd   :  { %p279_p3 = scmp.ne.s32.totalorder %s34_s25, %s278_s12  ;;  %p284_p5 = scmp.lt.s32.totalorder %s278_s12, %s278_s12 }
   0xf   :  { %p285_p6 = por %p284_p5, %p283_p4 }
  0x11   :  { %p286_p7 = pnand %p285_p6, %p279_p3 }
  0x13   :  { %289 = shalt.err (!%p286_p7)
}
  0x14   :  { %36 = dma.hbm_to_vmem [thread:$0]  %s570_s1, 512, %s34_s25, [#allocation7]  }
  0x15   :  { %s290_s17 = scalar_lea.hbm %s572_s3, 512 }
  0x16   :  { %p291_p8 = scmp.ne.s32.totalorder %s572_s3, %s290_s17  ;;  %p294_p9 = scmp.lt.u32.totalorder %s290_s17, %s572_s3 }
  0x18   :  { %p296_p10 = pnand %p294_p9, %p291_p8 }
  0x1a   :  { %299 = shalt.err (!%p296_p10)
}
  0x1b   :  { %s300_s22 = scalar_lea.vmem %s54_s27, 512  ;;  %p305_p12 = scmp.lt.s32.totalorder %s54_s27, %s54_s27 }
  0x1c   :  { %p301_p11 = scmp.ne.s32.totalorder %s54_s27, %s300_s22  ;;  %p306_p13 = scmp.lt.s32.totalorder %s300_s22, %s300_s22 }
  0x1e   :  { %p307_p0 = por %p306_p13, %p305_p12 }
  0x20   :  { %p308_p1 = pnand %p307_p0, %p301_p11 }
  0x22   :  { %311 = shalt.err (!%p308_p1)
}
  0x23   :  { %56 = dma.hbm_to_vmem [thread:$0]  %s572_s3, 512, %s54_s27, [#allocation10]  }
  0x24   :  { %s434_s24 = smov [#allocation3]   ;;  %s435_s26 = smov [#allocation8]  }
  0x25   :  { %s23_s25 = sshll.u32 %s434_s24, 4  ;;  %s43_s28 = sshll.u32 %s435_s26, 4  ;;  %s24_s25 = int_to_ptr.vmem [resolvable:$true] %s23_s25  ;;  %s44_s28 = int_to_ptr.vmem [resolvable:$true] %s43_s28 }
  0x26   :  { %s312_s8 = scalar_lea.hbm %s569_s0, 512 }
  0x27   :  { %p313_p2 = scmp.ne.s32.totalorder %s569_s0, %s312_s8  ;;  %p316_p3 = scmp.lt.u32.totalorder %s312_s8, %s569_s0 }
  0x29   :  { %p318_p4 = pnand %p316_p3, %p313_p2 }
  0x2b   :  { %321 = shalt.err (!%p318_p4)
}
  0x2c   :  { %s322_s3 = scalar_lea.vmem %s24_s25, 512  ;;  %p327_p6 = scmp.lt.s32.totalorder %s24_s25, %s24_s25 }
  0x2d   :  { %p323_p5 = scmp.ne.s32.totalorder %s24_s25, %s322_s3  ;;  %p328_p7 = scmp.lt.s32.totalorder %s322_s3, %s322_s3 }
  0x2f   :  { %p329_p8 = por %p328_p7, %p327_p6 }
  0x31   :  { %p330_p9 = pnand %p329_p8, %p323_p5 }
  0x33   :  { %333 = shalt.err (!%p330_p9)
}
  0x34   :  { %26 = dma.hbm_to_vmem [thread:$0]  %s569_s0, 512, %s24_s25, [#allocation4]  }
  0x35   :  { %s334_s16 = scalar_lea.hbm %s571_s2, 512 }
  0x36   :  { %p335_p10 = scmp.ne.s32.totalorder %s571_s2, %s334_s16  ;;  %p338_p11 = scmp.lt.u32.totalorder %s334_s16, %s571_s2 }
  0x38   :  { %p340_p12 = pnand %p338_p11, %p335_p10 }
  0x3a   :  { %343 = shalt.err (!%p340_p12)
}
  0x3b   :  { %s344_s21 = scalar_lea.vmem %s44_s28, 512  ;;  %p349_p0 = scmp.lt.s32.totalorder %s44_s28, %s44_s28 }
  0x3c   :  { %p345_p13 = scmp.ne.s32.totalorder %s44_s28, %s344_s21  ;;  %p350_p1 = scmp.lt.s32.totalorder %s344_s21, %s344_s21 }
  0x3e   :  { %p351_p2 = por %p350_p1, %p349_p0 }
  0x40   :  { %p352_p3 = pnand %p351_p2, %p345_p13 }
  0x42   :  { %355 = shalt.err (!%p352_p3)
}
  0x43   :  { %46 = dma.hbm_to_vmem [thread:$0]  %s571_s2, 512, %s44_s28, [#allocation7]  }
  0x44   :  { %s436_s1 = smov [#allocation11]   ;;  %s437_s24 = smov [#allocation12]  }
  0x45   :  { %s63_s23 = sshll.u32 %s436_s1, 4  ;;  %s73_s25 = sshll.u32 %s437_s24, 4  ;;  %s64_s23 = int_to_ptr.vmem [resolvable:$true] %s63_s23  ;;  %s74_s25 = int_to_ptr.vmem [resolvable:$true] %s73_s25 }
  0x46   :  { %s356_s30 = scalar_lea.hbm %s573_s4, 512 }
  0x47   :  { %p357_p4 = scmp.ne.s32.totalorder %s573_s4, %s356_s30  ;;  %p360_p5 = scmp.lt.u32.totalorder %s356_s30, %s573_s4 }
  0x49   :  { %p362_p6 = pnand %p360_p5, %p357_p4 }
  0x4b   :  { %365 = shalt.err (!%p362_p6)
}
  0x4c   :  { %s366_s2 = scalar_lea.vmem %s64_s23, 512  ;;  %p371_p8 = scmp.lt.s32.totalorder %s64_s23, %s64_s23 }
  0x4d   :  { %p367_p7 = scmp.ne.s32.totalorder %s64_s23, %s366_s2  ;;  %p372_p9 = scmp.lt.s32.totalorder %s366_s2, %s366_s2 }
  0x4f   :  { %p373_p10 = por %p372_p9, %p371_p8 }
  0x51   :  { %p374_p11 = pnand %p373_p10, %p367_p7 }
  0x53   :  { %377 = shalt.err (!%p374_p11)
}
  0x54   :  { %66 = dma.hbm_to_vmem [thread:$0]  %s573_s4, 512, %s64_s23, [#allocation10]  }
  0x55   :  { %s378_s13 = scalar_lea.hbm %s574_s5, 512 }
  0x56   :  { %p379_p12 = scmp.ne.s32.totalorder %s574_s5, %s378_s13  ;;  %p382_p13 = scmp.lt.u32.totalorder %s378_s13, %s574_s5 }
  0x58   :  { %p384_p0 = pnand %p382_p13, %p379_p12 }
  0x5a   :  { %387 = shalt.err (!%p384_p0)
}
  0x5b   :  { %s388_s18 = scalar_lea.vmem %s74_s25, 512  ;;  %p393_p2 = scmp.lt.s32.totalorder %s74_s25, %s74_s25 }
  0x5c   :  { %p389_p1 = scmp.ne.s32.totalorder %s74_s25, %s388_s18  ;;  %p394_p3 = scmp.lt.s32.totalorder %s388_s18, %s388_s18 }
  0x5e   :  { %p395_p4 = por %p394_p3, %p393_p2 }
  0x60   :  { %p396_p5 = pnand %p395_p4, %p389_p1 }
  0x62   :  { %399 = shalt.err (!%p396_p5)
}
  0x63   :  { %76 = dma.hbm_to_vmem [thread:$0]  %s574_s5, 512, %s74_s25, [#allocation13]  }
  0x64   :  { %422 = dma.done.wait [#allocation4], 512  }
  0x65   :  { %423 = vsyncadd [#allocation4], 4294966784 }
  0x66   :  { %424 = dma.done.wait [#allocation7], 1024  }
  0x67   :  { %425 = vsyncadd [#allocation7], 4294966272 }
  0x68   :  { %426 = dma.done.wait [#allocation10], 1024  }
  0x69   :  { %427 = vsyncadd [#allocation10], 4294966272 }
  0x6a   :  { %428 = dma.done.wait [#allocation13], 512  }
  0x6b   :  { %429 = vsyncadd [#allocation13], 4294966784  ;;  %v438_v0 = vmov 0   ;;  %v439_v1 = vmov 2   ;;  %v153_v2 = vld [vmem:[%s575_s6] sm:$0xff]  ;;  %v440_v3 = vmov 1  }
  0x6c   :  { %264 = vset.pattern.permute.xlu0 %v438_v0  ;;  %266 = vset.pattern.permute.xlu1 %v439_v1  ;;  %v105_v4 = vld [vmem:[#allocation6] sm:$0xff]  ;;  %v106_v5 = vld [vmem:[#allocation6 + $0x8] sm:$0xff]  ;;  %v107_v6 = vld [vmem:[#allocation6 + $0x10] sm:$0xff]  ;;  %s441_s5 = smov [#allocation14]   ;;  %vm232_vm0 = vcmask 0  }
  0x6d   :  { %156 = vperm.xlu0 %264, %v153_v2   ;;  %176 = vperm.xlu1 %266, %v153_v2   ;;  %v109_v7 = vld [vmem:[#allocation3] sm:$0xff]  ;;  %v110_v8 = vld [vmem:[#allocation3 + $0x8] sm:$0xff]  ;;  %v111_v9 = vld [vmem:[#allocation3 + $0x10] sm:$0xff]  ;;  %s240_s6 = sshll.u32 %s441_s5, 4  ;;  %s241_s6 = int_to_ptr.vmem [resolvable:$true] %s240_s6 }
  0x6e   :  { %v117_v10 = vld [vmem:[#allocation9] sm:$0xff]  ;;  %v118_v11 = vld [vmem:[#allocation9 + $0x8] sm:$0xff]  ;;  %v119_v12 = vld [vmem:[#allocation9 + $0x10] sm:$0xff]  ;;  %v113_v24 = vsub.f32 %v105_v4, %v109_v7  ;;  %v114_v26 = vsub.f32 %v106_v5, %v110_v8  ;;  %v115_v27 = vsub.f32 %v107_v6, %v111_v9  ;;  %s400_s22 = scalar_lea.vmem %s241_s6, 16  ;;  %s404_s1 = scalar_lea.vmem %s241_s6, 32 }
  0x6f   :  { %v120_v13 = vld [vmem:[#allocation9 + $0x18] sm:$0xff]  ;;  %v121_v14 = vld [vmem:[#allocation8] sm:$0xff]  ;;  %v130_v16 = vld [vmem:[#allocation12 + $0x8] sm:$0xff]  ;;  %p401_p6 = scmp.ne.s32.totalorder %s241_s6, %s400_s22  ;;  %p405_p7 = scmp.lt.s32.totalorder %s241_s6, %s241_s6 }
  0x70   :  { %v129_v15 = vld [vmem:[#allocation12] sm:$0xff]  ;;  %v134_v18 = vld [vmem:[#allocation11 + $0x8] sm:$0xff]  ;;  %v123_v20 = vld [vmem:[#allocation8 + $0x10] sm:$0xff]  ;;  %v125_v33 = vsub.f32 %v117_v10, %v121_v14  ;;  %v141_v39 = vmul.f32 %v113_v24, %v113_v24  ;;  %v142_v42 = vmul.f32 %v114_v26, %v114_v26  ;;  %v143_v43 = vmul.f32 %v115_v27, %v115_v27  ;;  %p406_p8 = scmp.lt.s32.totalorder %s404_s1, %s400_s22 }
  0x71   :  { %265 = vset.pattern.permute.xlu0 %v440_v3  ;;  %v133_v17 = vld [vmem:[#allocation11] sm:$0xff]  ;;  %v122_v19 = vld [vmem:[#allocation8 + $0x8] sm:$0xff]  ;;  %v124_v21 = vld [vmem:[#allocation8 + $0x18] sm:$0xff]  ;;  %v138_v30 = vsub.f32 %v130_v16, %v134_v18  ;;  %v127_v35 = vsub.f32 %v119_v12, %v123_v20 }
  0x72   :  { %164 = vperm.xlu0 %265, %v153_v2   ;;  %v108_v22 = vld [vmem:[#allocation6 + $0x18] sm:$0xff]  ;;  %v131_v25 = vld [vmem:[#allocation12 + $0x10] sm:$0xff]  ;;  %v137_v29 = vsub.f32 %v129_v15, %v133_v17  ;;  %v126_v34 = vsub.f32 %v118_v11, %v122_v19  ;;  %v128_v36 = vsub.f32 %v120_v13, %v124_v21  ;;  %v145_v46 = vmul.f32 %v125_v33, %v125_v33  ;;  %p407_p9 = por %p406_p8, %p405_p7 }
  0x73   :  { %v112_v23 = vld [vmem:[#allocation3 + $0x18] sm:$0xff]  ;;  %v135_v28 = vld [vmem:[#allocation11 + $0x10] sm:$0xff]  ;;  %v150_v45 = vmul.f32 %v138_v30, %v138_v30  ;;  %v147_v48 = vmul.f32 %v127_v35, %v127_v35 }
  0x74   :  { %v132_v31 = vld [vmem:[#allocation12 + $0x18] sm:$0xff]  ;;  %v116_v37 = vsub.f32 %v108_v22, %v112_v23  ;;  %v139_v40 = vsub.f32 %v131_v25, %v135_v28  ;;  %v149_v44 = vmul.f32 %v137_v29, %v137_v29  ;;  %v146_v47 = vmul.f32 %v126_v34, %v126_v34  ;;  %p408_p10 = pnand %p407_p9, %p401_p6 }
  0x75   :  { %v136_v32 = vld [vmem:[#allocation11 + $0x18] sm:$0xff]  ;;  %v148_v49 = vmul.f32 %v128_v36, %v128_v36 }
  0x76   :  { %267 = vset.pattern.permute.xlu0 %v439_v1  ;;  %v140_v41 = vsub.f32 %v132_v31, %v136_v32  ;;  %v144_v51 = vmul.f32 %v116_v37, %v116_v37  ;;  %v151_v53 = vmul.f32 %v139_v40, %v139_v40 }
  0x78   :  { %v152_v54 = vmul.f32 %v140_v41, %v140_v41 }
  0xec   :  { %v157_v38 = vpop.permute.xlu0 %156  ;;  %v177_v50 = vpop.permute.xlu1 %176 }
  0xed   :  { %v159_v52 = vmul.f32 %v157_v38, %v141_v39  ;;  %v160_v55 = vmul.f32 %v157_v38, %v142_v42  ;;  %v161_v56 = vmul.f32 %v157_v38, %v143_v43  ;;  %v179_v58 = vmul.f32 %v177_v50, %v149_v44 }
  0xee   :  { %v180_v59 = vmul.f32 %v177_v50, %v150_v45  ;;  %v162_v0 = vmul.f32 %v157_v38, %v144_v51  ;;  %v181_v4 = vmul.f32 %v177_v50, %v151_v53  ;;  %v182_v6 = vmul.f32 %v177_v50, %v152_v54 }
  0xf1   :  { %v165_v57 = vpop.permute.xlu0 %164 }
  0xf2   :  { %v167_v60 = vmul.f32 %v165_v57, %v145_v46  ;;  %v168_v61 = vmul.f32 %v165_v57, %v146_v47  ;;  %v169_v62 = vmul.f32 %v165_v57, %v147_v48  ;;  %v170_v63 = vmul.f32 %v165_v57, %v148_v49 }
  0xf4   :  { %v171_v1 = vadd.f32 %v167_v60, %v159_v52  ;;  %v172_v2 = vadd.f32 %v168_v61, %v160_v55  ;;  %v173_v3 = vadd.f32 %v169_v62, %v161_v56  ;;  %v174_v5 = vadd.f32 %v170_v63, %v162_v0 }
  0xf6   :  { %v183_v7 = vadd.f32 %v179_v58, %v171_v1  ;;  %v184_v8 = vadd.f32 %v180_v59, %v172_v2  ;;  %v185_v9 = vadd.f32 %v181_v4, %v173_v3  ;;  %v186_v11 = vadd.f32 %v182_v6, %v174_v5 }
  0xf8   :  { %v218_v10 = vadd.f32 %v184_v8, %v183_v7 }
  0xfa   :  { %v219_v12 = vadd.f32 %v218_v10, %v185_v9 }
  0xfc   :  { %v220_v13 = vadd.f32 %v219_v12, %v186_v11 }
  0xfe   :  { %221 = vadd.xlane.f32.xlu1 %v220_v13 }
 0x18b   :  { %v222_v14 = vpop.xlane.xlu1 %221 }
 0x18c   :  { %v223_v15 = vrot.slane %v222_v14, 4 }
 0x18e   :  { %v224_v16 = vadd.f32 %v223_v15, %v222_v14 }
 0x190   :  { %v225_v17 = vrot.slane %v224_v16, 2 }
 0x192   :  { %v226_v18 = vadd.f32 %v225_v17, %v224_v16 }
 0x194   :  { %v227_v19 = vrot.slane %v226_v18, 1 }
 0x196   :  { %v228_v20 = vadd.f32 %v227_v19, %v226_v18 }
 0x198   :  { %252 = vpush %v228_v20 }
 0x1c9   :  { %s253_s0 = spop %252 }
 0x1ca   :  { %v230_v21 = vstv %s253_s0 }
 0x1cb   :  { %v231_v22 = vmul.f32 0.125, %v230_v21 }
 0x1cd   :  { %233 = vst.msk [vmem:[#allocation14] sm:$0x1] %vm232_vm0, %v231_v22 }
 0x1ce   :  { %411 = shalt.err (!%p408_p10)
}
 0x1cf   :  { %s412_s25 = scalar_lea.hbm %s576_s7, 16 }
 0x1d0   :  { %p413_p11 = scmp.ne.s32.totalorder %s576_s7, %s412_s25  ;;  %p416_p12 = scmp.lt.u32.totalorder %s412_s25, %s576_s7 }
 0x1d2   :  { %p418_p13 = pnand %p416_p12, %p413_p11 }
 0x1d4   :  { %421 = shalt.err (!%p418_p13)
}
 0x1d5   :  { %243 = dma.vmem_to_hbm [thread:$0]  %s241_s6, 16, %s576_s7, [#allocation5]  }
 0x1d6   :  { %430 = dma.done.wait [#allocation5], 16  }
 0x1d7   :  { %431 = vsyncadd [#allocation5], 4294967280 }
 0x1d8   :  { %247 = vsyncpa [#allocation4], 1 }
 0x1d9   :  { %248 = vsyncpa [#allocation7], 1 }
 0x1da   :  { %249 = vsyncpa [#allocation10], 1 }
 0x1db   :  { %250 = vsyncpa [#allocation13], 1 }
 0x1dc   :  { %251 = vsyncpa [#allocation5], 1 }

</bundles_post_ra>
